<compile_context>
chip_gen: v5e
topology: v5e:2x2
jax: 0.10.0
libtpu: 0.0.40
codegen_flags: <defaults>
</compile_context>

<pallas_src>
import math

import jax
import jax.numpy as jnp
import numpy as np
from jax.experimental import pallas as pl
from jax.experimental.pallas import tpu as pltpu

# ---- problem sizes (small, consistent with the module) ----
S = 8          # sequence length
B = 2          # batch
E = 32         # embedding_dim
H = 4          # heads_number
KQ = 8         # key_and_query_dim
VD = 8         # value_dim
FF = 64        # feed_forward_size
N = S * B      # fused row count (seq-major: row i -> (seq=i//B, batch=i%B))
HV = H * VD
SCALE = math.sqrt(KQ)
LN1_EPS = 1e-5   # nn.LayerNorm default eps
LN2_EPS = 1e-6   # second LayerNorm uses eps=1e-6


def encoder_layer_kernel(x_ref, amask_ref, wqkv_ref, wow2_ref, w1_ref, vecs_ref, out_ref):
    """Whole encoder layer (both batch elements) in a single grid step."""
    x = x_ref[...]              # (N, E)
    amask = amask_ref[...]      # (N, N) additive mask: 0 or -1e9
    vecs = vecs_ref[...]        # (8, FF) packed small params

    # --- fused QKV projection: ONE MXU matmul [Q | K | V] ---
    qkv = jnp.dot(x, wqkv_ref[...], preferred_element_type=jnp.float32)   # (N, 3*H*KQ)

    inv_scale = 1.0 / SCALE
    attn = jnp.zeros((N, E), jnp.float32)
    for h in range(H):                                        # static unroll, H=4
        qh = qkv[:, h * KQ:(h + 1) * KQ]                                      # (N, KQ)
        kh = qkv[:, H * KQ + h * KQ:H * KQ + (h + 1) * KQ]                    # (N, KQ)
        vh = qkv[:, 2 * H * KQ + h * VD:2 * H * KQ + (h + 1) * VD]            # (N, VD)
        s = jnp.dot(qh, kh.T, preferred_element_type=jnp.float32) * inv_scale + amask
        m = jnp.max(s, axis=-1, keepdims=True)
        e = jnp.exp(s - m)
        p = e * pl.reciprocal(jnp.sum(e, axis=-1, keepdims=True), approx=True)
        ctx = jnp.dot(p, vh, preferred_element_type=jnp.float32)              # (N, VD)
        # fold head context directly into the output projection (no lane concat)
        woh = wow2_ref[h * VD:(h + 1) * VD, :]                                # (VD, E)
        attn = attn + jnp.dot(ctx, woh, preferred_element_type=jnp.float32)   # (N, E)

    # --- Residual + LayerNorm(eps=1e-5) ---
    y = attn + x
    mu = jnp.mean(y, axis=-1, keepdims=True)
    var = jnp.mean((y - mu) ** 2, axis=-1, keepdims=True)
    y = (y - mu) * jax.lax.rsqrt(var + LN1_EPS) * vecs[0:1, :E] + vecs[1:2, :E]

    # --- FeedForward: Linear -> ReLU -> Linear ---
    h1 = jnp.dot(y, w1_ref[...], preferred_element_type=jnp.float32) + vecs[5:6, :]
    h1 = jnp.maximum(h1, 0.0)
    ff = jnp.dot(h1, wow2_ref[HV:HV + FF, :], preferred_element_type=jnp.float32) + vecs[4:5, :E]

    # --- Residual + LayerNorm(eps=1e-6) ---
    z = ff + y
    mu2 = jnp.mean(z, axis=-1, keepdims=True)
    var2 = jnp.mean((z - mu2) ** 2, axis=-1, keepdims=True)
    z = (z - mu2) * jax.lax.rsqrt(var2 + LN2_EPS) * vecs[2:3, :E] + vecs[3:4, :E]

    out_ref[...] = z


def pack_params(params):
    """Host-side (run once): pack the 12 parameter tensors into 4 DMA-friendly arrays."""
    (wq, wk, wv, wo, ln1_g, ln1_b, w1, b1, w2, b2, ln2_g, ln2_b) = params
    w_qkv = jnp.concatenate([wq, wk, wv], axis=1)                 # (E, 3*H*KQ) = (32, 96)
    w_ow2 = jnp.concatenate([wo, w2], axis=0)                     # (H*VD+FF, E) = (96, 32)

    def row(v):
        v = jnp.asarray(v, jnp.float32).reshape(-1)
        return jnp.pad(v, (0, FF - v.shape[0]))

    vecs = jnp.stack([row(ln1_g), row(ln1_b), row(ln2_g), row(ln2_b),
                      row(b2), row(b1),
                      jnp.zeros((FF,), jnp.float32), jnp.zeros((FF,), jnp.float32)],
                     axis=0)                                      # (8, FF)
    return (w_qkv.astype(jnp.float32), w_ow2.astype(jnp.float32),
            jnp.asarray(w1, jnp.float32), vecs)


def _full_spec(shape):
    # untiled full-array block, constant index map (single grid step)
    return pl.BlockSpec(shape, lambda i: (0,) * len(shape))


@jax.jit
def encoder_layer(x_sbe, mask_b11s, packed):
    """x_sbe: (S, B, E) float32;  mask_b11s: (B, 1, 1, S) bool (True = padding).
    Returns (out (S, B, E), mask) matching EncoderLayer.forward."""
    w_qkv, w_ow2, w1, vecs = packed

    # free reshape (no transpose): row i of x2d is (seq=i//B, batch=i%B)
    x2d = x_sbe.astype(jnp.float32).reshape(N, E)

    # block-diagonal additive mask: -1e9 for cross-batch or padded keys (finite -> no NaN risk)
    key_mask = mask_b11s.reshape(B, S)
    km_flat = jnp.transpose(key_mask).reshape(N)              # key j -> (seq=j//B, batch=j%B)
    bid = jnp.arange(N, dtype=jnp.int32) % B
    bad = (bid[:, None] != bid[None, :]) | km_flat[None, :]
    amask = jnp.where(bad, -1e9, 0.0).astype(jnp.float32)     # (N, N)

    out2d = pl.pallas_call(
        encoder_layer_kernel,
        out_shape=jax.ShapeDtypeStruct((N, E), jnp.float32),
        grid_spec=pltpu.PrefetchScalarGridSpec(
            num_scalar_prefetch=0,
            grid=(1,),                                        # collapsed grid: one step for all of B
            in_specs=[_full_spec((N, E)),
                      _full_spec((N, N)),
                      _full_spec((E, 3 * H * KQ)),
                      _full_spec((HV + FF, E)),
                      _full_spec((E, FF)),
                      _full_spec((8, FF))],
            out_specs=_full_spec((N, E)),
        ),
        compiler_params=pltpu.CompilerParams(
            dimension_semantics=("arbitrary",)),              # single step; megacore sharding moot
    )(x2d, amask, w_qkv, w_ow2, w1, vecs)

    return out2d.reshape(S, B, E), mask_b11s


# ---------------- pure-JAX reference (mirrors the PyTorch forward) ----------------
def encoder_layer_ref(x_sbe, mask_b11s, params):
    (wq, wk, wv, wo, ln1_g, ln1_b, w1, b1, w2, b2, ln2_g, ln2_b) = params
    x = x_sbe  # (S, B, E)
    q = jnp.einsum('sbe,ef->sbf', x, wq).reshape(S, B, H, KQ).transpose(1, 2, 0, 3)  # (B,H,S,KQ)
    k = jnp.einsum('sbe,ef->sbf', x, wk).reshape(S, B, H, KQ).transpose(1, 2, 3, 0)  # (B,H,KQ,S)
    v = jnp.einsum('sbe,ef->sbf', x, wv).reshape(S, B, H, VD).transpose(1, 2, 0, 3)  # (B,H,S,VD)
    att = jnp.matmul(q, k) / SCALE                                                   # (B,H,S,S)
    att = jnp.where(mask_b11s, -jnp.inf, att)
    att = jax.nn.softmax(att, axis=-1)
    ctx = jnp.matmul(att, v)                                                         # (B,H,S,VD)
    ctx = ctx.transpose(0, 2, 1, 3).reshape(B, S, H * VD)
    attn_out = jnp.einsum('bsf,fe->bse', ctx, wo).transpose(1, 0, 2)                 # (S,B,E)

    def ln(t, g, bta, eps):
        mu = jnp.mean(t, axis=-1, keepdims=True)
        var = jnp.mean((t - mu) ** 2, axis=-1, keepdims=True)
        return (t - mu) / jnp.sqrt(var + eps) * g.reshape(-1) + bta.reshape(-1)

    y = ln(attn_out + x, ln1_g, ln1_b, LN1_EPS)
    h1 = jnp.maximum(jnp.einsum('sbe,ef->sbf', y, w1) + b1.reshape(-1), 0.0)
    ff = jnp.einsum('sbf,fe->sbe', h1, w2) + b2.reshape(-1)
    z = ln(ff + y, ln2_g, ln2_b, LN2_EPS)
    return z


def init_params(key):
    ks = jax.random.split(key, 8)
    def lin(k, fan_in, fan_out):
        lim = 1.0 / math.sqrt(fan_in)
        return jax.random.uniform(k, (fan_in, fan_out), jnp.float32, -lim, lim)
    wq = lin(ks[0], E, H * KQ)
    wk = lin(ks[1], E, H * KQ)
    wv = lin(ks[2], E, H * VD)
    wo = lin(ks[3], H * VD, E)
    ln1_g = jnp.ones((1, E), jnp.float32)
    ln1_b = jnp.zeros((1, E), jnp.float32)
    w1 = lin(ks[4], E, FF)
    b1 = jax.random.uniform(ks[5], (1, FF), jnp.float32, -0.1, 0.1)
    w2 = lin(ks[6], FF, E)
    b2 = jax.random.uniform(ks[7], (1, E), jnp.float32, -0.1, 0.1)
    ln2_g = jnp.ones((1, E), jnp.float32)
    ln2_b = jnp.zeros((1, E), jnp.float32)
    return (wq, wk, wv, wo, ln1_g, ln1_b, w1, b1, w2, b2, ln2_g, ln2_b)


if __name__ == "__main__":
    key = jax.random.PRNGKey(0)
    k_x, k_m, k_p = jax.random.split(key, 3)

    x = jax.random.normal(k_x, (S, B, E), jnp.float32)              # (seq, batch, embed)
    mask = jax.random.uniform(k_m, (B, 1, 1, S)) > 0.7              # True = padding/masked
    mask = mask.at[:, :, :, 0].set(False)                           # never mask everything
    params = init_params(k_p)
    packed = pack_params(params)                                    # host-side packing, once

    out, out_mask = encoder_layer(x, mask, packed)
    out = jax.block_until_ready(out)

    ref = encoder_layer_ref(x, mask, params)
    # tolerance accommodates the EUP approximate-reciprocal softmax normalization
    np.testing.assert_allclose(np.asarray(out), np.asarray(ref), rtol=2e-2, atol=2e-2)

    print("KERNEL_OK")
</pallas_src>

<mosaic_0001>
module attributes {stable_mosaic.version = 11 : i64} {
  func.func @encoder_layer_kernel(%arg0: i32, %arg1: memref<16x32xf32, #tpu.memory_space<vmem>>, %arg2: memref<16x16xf32, #tpu.memory_space<vmem>>, %arg3: memref<32x96xf32, #tpu.memory_space<vmem>>, %arg4: memref<96x32xf32, #tpu.memory_space<vmem>>, %arg5: memref<32x64xf32, #tpu.memory_space<vmem>>, %arg6: memref<8x64xf32, #tpu.memory_space<vmem>>, %arg7: memref<16x32xf32, #tpu.memory_space<vmem>>) attributes {dimension_semantics = [#tpu.dimension_semantics<arbitrary>], iteration_bounds = array<i64: 1>, scalar_prefetch = 0 : i64, scratch_operands = 0 : i64, tpu.core_type = #tpu.core_type<tc>, window_params = [{pipeline_mode = #tpu.pipeline_mode<synchronous>, transform_indices = @transform_0, window_bounds = array<i64: 16, 32>}, {pipeline_mode = #tpu.pipeline_mode<synchronous>, transform_indices = @transform_1, window_bounds = array<i64: 16, 16>}, {pipeline_mode = #tpu.pipeline_mode<synchronous>, transform_indices = @transform_2, window_bounds = array<i64: 32, 96>}, {pipeline_mode = #tpu.pipeline_mode<synchronous>, transform_indices = @transform_3, window_bounds = array<i64: 96, 32>}, {pipeline_mode = #tpu.pipeline_mode<synchronous>, transform_indices = @transform_4, window_bounds = array<i64: 32, 64>}, {pipeline_mode = #tpu.pipeline_mode<synchronous>, transform_indices = @transform_5, window_bounds = array<i64: 8, 64>}, {pipeline_mode = #tpu.pipeline_mode<synchronous>, transform_indices = @transform_6, window_bounds = array<i64: 16, 32>}]} {
    %c0 = arith.constant 0 : index
    %c0_0 = arith.constant 0 : index
    %0 = vector.load %arg1[%c0, %c0_0] : memref<16x32xf32, #tpu.memory_space<vmem>>, vector<16x32xf32>
    %c0_1 = arith.constant 0 : index
    %c0_2 = arith.constant 0 : index
    %1 = vector.load %arg2[%c0_1, %c0_2] : memref<16x16xf32, #tpu.memory_space<vmem>>, vector<16x16xf32>
    %c0_3 = arith.constant 0 : index
    %c0_4 = arith.constant 0 : index
    %2 = vector.load %arg6[%c0_3, %c0_4] : memref<8x64xf32, #tpu.memory_space<vmem>>, vector<8x64xf32>
    %c0_5 = arith.constant 0 : index
    %c0_6 = arith.constant 0 : index
    %3 = vector.load %arg3[%c0_5, %c0_6] : memref<32x96xf32, #tpu.memory_space<vmem>>, vector<32x96xf32>
    %cst = arith.constant dense<0.000000e+00> : vector<16x96xf32>
    %4 = tpu.matmul %0, %3, %cst {dimension_numbers = #tpu.dot_dimension_numbers<[1], [0], [0], [1], [0, 0, 1, 1], [], []>} : vector<16x32xf32>, vector<32x96xf32>, vector<16x96xf32> -> vector<16x96xf32>
    %cst_7 = arith.constant 0.000000e+00 : f32
    %5 = vector.broadcast %cst_7 : f32 to vector<16x32xf32>
    %6 = vector.extract_strided_slice %4 {offsets = [0, 0], sizes = [16, 8], strides = [1, 1]} : vector<16x96xf32> to vector<16x8xf32>
    %7 = vector.extract_strided_slice %4 {offsets = [0, 32], sizes = [16, 8], strides = [1, 1]} : vector<16x96xf32> to vector<16x8xf32>
    %8 = vector.extract_strided_slice %4 {offsets = [0, 64], sizes = [16, 8], strides = [1, 1]} : vector<16x96xf32> to vector<16x8xf32>
    %9 = tpu.transpose %7, [1, 0] : vector<16x8xf32> -> vector<8x16xf32>
    %cst_8 = arith.constant dense<0.000000e+00> : vector<16x16xf32>
    %10 = tpu.matmul %6, %9, %cst_8 {dimension_numbers = #tpu.dot_dimension_numbers<[1], [0], [0], [1], [0, 0, 1, 1], [], []>} : vector<16x8xf32>, vector<8x16xf32>, vector<16x16xf32> -> vector<16x16xf32>
    %cst_9 = arith.constant 0.353553385 : f32
    %11 = vector.broadcast %cst_9 : f32 to vector<16x16xf32>
    %12 = arith.mulf %10, %11 : vector<16x16xf32>
    %13 = arith.addf %12, %1 : vector<16x16xf32>
    %cst_10 = arith.constant dense<0xFF800000> : vector<16xf32>
    %14 = vector.multi_reduction <maximumf>, %13, %cst_10 [1] : vector<16x16xf32> to vector<16xf32>
    %15 = vector.shape_cast %14 : vector<16xf32> to vector<16x1xf32>
    %16 = vector.broadcast %15 : vector<16x1xf32> to vector<16x16xf32>
    %17 = arith.subf %13, %16 : vector<16x16xf32>
    %18 = math.exp %17 : vector<16x16xf32>
    %cst_11 = arith.constant dense<0.000000e+00> : vector<16xf32>
    %19 = vector.multi_reduction <add>, %18, %cst_11 [1] : vector<16x16xf32> to vector<16xf32>
    %20 = vector.shape_cast %19 : vector<16xf32> to vector<16x1xf32>
    %21 = tpu.reciprocal %20 {approx = true} : vector<16x1xf32> -> vector<16x1xf32>
    %22 = vector.broadcast %21 : vector<16x1xf32> to vector<16x16xf32>
    %23 = arith.mulf %18, %22 : vector<16x16xf32>
    %cst_12 = arith.constant dense<0.000000e+00> : vector<16x8xf32>
    %24 = tpu.matmul %23, %8, %cst_12 {dimension_numbers = #tpu.dot_dimension_numbers<[1], [0], [0], [1], [0, 0, 1, 1], [], []>} : vector<16x16xf32>, vector<16x8xf32>, vector<16x8xf32> -> vector<16x8xf32>
    %c0_13 = arith.constant 0 : index
    %c0_14 = arith.constant 0 : index
    %25 = vector.load %arg4[%c0_13, %c0_14] : memref<96x32xf32, #tpu.memory_space<vmem>>, vector<8x32xf32>
    %cst_15 = arith.constant dense<0.000000e+00> : vector<16x32xf32>
    %26 = tpu.matmul %24, %25, %cst_15 {dimension_numbers = #tpu.dot_dimension_numbers<[1], [0], [0], [1], [0, 0, 1, 1], [], []>} : vector<16x8xf32>, vector<8x32xf32>, vector<16x32xf32> -> vector<16x32xf32>
    %27 = arith.addf %5, %26 : vector<16x32xf32>
    %28 = vector.extract_strided_slice %4 {offsets = [0, 8], sizes = [16, 8], strides = [1, 1]} : vector<16x96xf32> to vector<16x8xf32>
    %29 = vector.extract_strided_slice %4 {offsets = [0, 40], sizes = [16, 8], strides = [1, 1]} : vector<16x96xf32> to vector<16x8xf32>
    %30 = vector.extract_strided_slice %4 {offsets = [0, 72], sizes = [16, 8], strides = [1, 1]} : vector<16x96xf32> to vector<16x8xf32>
    %31 = tpu.transpose %29, [1, 0] : vector<16x8xf32> -> vector<8x16xf32>
    %cst_16 = arith.constant dense<0.000000e+00> : vector<16x16xf32>
    %32 = tpu.matmul %28, %31, %cst_16 {dimension_numbers = #tpu.dot_dimension_numbers<[1], [0], [0], [1], [0, 0, 1, 1], [], []>} : vector<16x8xf32>, vector<8x16xf32>, vector<16x16xf32> -> vector<16x16xf32>
    %cst_17 = arith.constant 0.353553385 : f32
    %33 = vector.broadcast %cst_17 : f32 to vector<16x16xf32>
    %34 = arith.mulf %32, %33 : vector<16x16xf32>
    %35 = arith.addf %34, %1 : vector<16x16xf32>
    %cst_18 = arith.constant dense<0xFF800000> : vector<16xf32>
    %36 = vector.multi_reduction <maximumf>, %35, %cst_18 [1] : vector<16x16xf32> to vector<16xf32>
    %37 = vector.shape_cast %36 : vector<16xf32> to vector<16x1xf32>
    %38 = vector.broadcast %37 : vector<16x1xf32> to vector<16x16xf32>
    %39 = arith.subf %35, %38 : vector<16x16xf32>
    %40 = math.exp %39 : vector<16x16xf32>
    %cst_19 = arith.constant dense<0.000000e+00> : vector<16xf32>
    %41 = vector.multi_reduction <add>, %40, %cst_19 [1] : vector<16x16xf32> to vector<16xf32>
    %42 = vector.shape_cast %41 : vector<16xf32> to vector<16x1xf32>
    %43 = tpu.reciprocal %42 {approx = true} : vector<16x1xf32> -> vector<16x1xf32>
    %44 = vector.broadcast %43 : vector<16x1xf32> to vector<16x16xf32>
    %45 = arith.mulf %40, %44 : vector<16x16xf32>
    %cst_20 = arith.constant dense<0.000000e+00> : vector<16x8xf32>
    %46 = tpu.matmul %45, %30, %cst_20 {dimension_numbers = #tpu.dot_dimension_numbers<[1], [0], [0], [1], [0, 0, 1, 1], [], []>} : vector<16x16xf32>, vector<16x8xf32>, vector<16x8xf32> -> vector<16x8xf32>
    %c8 = arith.constant 8 : index
    %c0_21 = arith.constant 0 : index
    %47 = vector.load %arg4[%c8, %c0_21] : memref<96x32xf32, #tpu.memory_space<vmem>>, vector<8x32xf32>
    %cst_22 = arith.constant dense<0.000000e+00> : vector<16x32xf32>
    %48 = tpu.matmul %46, %47, %cst_22 {dimension_numbers = #tpu.dot_dimension_numbers<[1], [0], [0], [1], [0, 0, 1, 1], [], []>} : vector<16x8xf32>, vector<8x32xf32>, vector<16x32xf32> -> vector<16x32xf32>
    %49 = arith.addf %27, %48 : vector<16x32xf32>
    %50 = vector.extract_strided_slice %4 {offsets = [0, 16], sizes = [16, 8], strides = [1, 1]} : vector<16x96xf32> to vector<16x8xf32>
    %51 = vector.extract_strided_slice %4 {offsets = [0, 48], sizes = [16, 8], strides = [1, 1]} : vector<16x96xf32> to vector<16x8xf32>
    %52 = vector.extract_strided_slice %4 {offsets = [0, 80], sizes = [16, 8], strides = [1, 1]} : vector<16x96xf32> to vector<16x8xf32>
    %53 = tpu.transpose %51, [1, 0] : vector<16x8xf32> -> vector<8x16xf32>
    %cst_23 = arith.constant dense<0.000000e+00> : vector<16x16xf32>
    %54 = tpu.matmul %50, %53, %cst_23 {dimension_numbers = #tpu.dot_dimension_numbers<[1], [0], [0], [1], [0, 0, 1, 1], [], []>} : vector<16x8xf32>, vector<8x16xf32>, vector<16x16xf32> -> vector<16x16xf32>
    %cst_24 = arith.constant 0.353553385 : f32
    %55 = vector.broadcast %cst_24 : f32 to vector<16x16xf32>
    %56 = arith.mulf %54, %55 : vector<16x16xf32>
    %57 = arith.addf %56, %1 : vector<16x16xf32>
    %cst_25 = arith.constant dense<0xFF800000> : vector<16xf32>
    %58 = vector.multi_reduction <maximumf>, %57, %cst_25 [1] : vector<16x16xf32> to vector<16xf32>
    %59 = vector.shape_cast %58 : vector<16xf32> to vector<16x1xf32>
    %60 = vector.broadcast %59 : vector<16x1xf32> to vector<16x16xf32>
    %61 = arith.subf %57, %60 : vector<16x16xf32>
    %62 = math.exp %61 : vector<16x16xf32>
    %cst_26 = arith.constant dense<0.000000e+00> : vector<16xf32>
    %63 = vector.multi_reduction <add>, %62, %cst_26 [1] : vector<16x16xf32> to vector<16xf32>
    %64 = vector.shape_cast %63 : vector<16xf32> to vector<16x1xf32>
    %65 = tpu.reciprocal %64 {approx = true} : vector<16x1xf32> -> vector<16x1xf32>
    %66 = vector.broadcast %65 : vector<16x1xf32> to vector<16x16xf32>
    %67 = arith.mulf %62, %66 : vector<16x16xf32>
    %cst_27 = arith.constant dense<0.000000e+00> : vector<16x8xf32>
    %68 = tpu.matmul %67, %52, %cst_27 {dimension_numbers = #tpu.dot_dimension_numbers<[1], [0], [0], [1], [0, 0, 1, 1], [], []>} : vector<16x16xf32>, vector<16x8xf32>, vector<16x8xf32> -> vector<16x8xf32>
    %c16 = arith.constant 16 : index
    %c0_28 = arith.constant 0 : index
    %69 = vector.load %arg4[%c16, %c0_28] : memref<96x32xf32, #tpu.memory_space<vmem>>, vector<8x32xf32>
    %cst_29 = arith.constant dense<0.000000e+00> : vector<16x32xf32>
    %70 = tpu.matmul %68, %69, %cst_29 {dimension_numbers = #tpu.dot_dimension_numbers<[1], [0], [0], [1], [0, 0, 1, 1], [], []>} : vector<16x8xf32>, vector<8x32xf32>, vector<16x32xf32> -> vector<16x32xf32>
    %71 = arith.addf %49, %70 : vector<16x32xf32>
    %72 = vector.extract_strided_slice %4 {offsets = [0, 24], sizes = [16, 8], strides = [1, 1]} : vector<16x96xf32> to vector<16x8xf32>
    %73 = vector.extract_strided_slice %4 {offsets = [0, 56], sizes = [16, 8], strides = [1, 1]} : vector<16x96xf32> to vector<16x8xf32>
    %74 = vector.extract_strided_slice %4 {offsets = [0, 88], sizes = [16, 8], strides = [1, 1]} : vector<16x96xf32> to vector<16x8xf32>
    %75 = tpu.transpose %73, [1, 0] : vector<16x8xf32> -> vector<8x16xf32>
    %cst_30 = arith.constant dense<0.000000e+00> : vector<16x16xf32>
    %76 = tpu.matmul %72, %75, %cst_30 {dimension_numbers = #tpu.dot_dimension_numbers<[1], [0], [0], [1], [0, 0, 1, 1], [], []>} : vector<16x8xf32>, vector<8x16xf32>, vector<16x16xf32> -> vector<16x16xf32>
    %cst_31 = arith.constant 0.353553385 : f32
    %77 = vector.broadcast %cst_31 : f32 to vector<16x16xf32>
    %78 = arith.mulf %76, %77 : vector<16x16xf32>
    %79 = arith.addf %78, %1 : vector<16x16xf32>
    %cst_32 = arith.constant dense<0xFF800000> : vector<16xf32>
    %80 = vector.multi_reduction <maximumf>, %79, %cst_32 [1] : vector<16x16xf32> to vector<16xf32>
    %81 = vector.shape_cast %80 : vector<16xf32> to vector<16x1xf32>
    %82 = vector.broadcast %81 : vector<16x1xf32> to vector<16x16xf32>
    %83 = arith.subf %79, %82 : vector<16x16xf32>
    %84 = math.exp %83 : vector<16x16xf32>
    %cst_33 = arith.constant dense<0.000000e+00> : vector<16xf32>
    %85 = vector.multi_reduction <add>, %84, %cst_33 [1] : vector<16x16xf32> to vector<16xf32>
    %86 = vector.shape_cast %85 : vector<16xf32> to vector<16x1xf32>
    %87 = tpu.reciprocal %86 {approx = true} : vector<16x1xf32> -> vector<16x1xf32>
    %88 = vector.broadcast %87 : vector<16x1xf32> to vector<16x16xf32>
    %89 = arith.mulf %84, %88 : vector<16x16xf32>
    %cst_34 = arith.constant dense<0.000000e+00> : vector<16x8xf32>
    %90 = tpu.matmul %89, %74, %cst_34 {dimension_numbers = #tpu.dot_dimension_numbers<[1], [0], [0], [1], [0, 0, 1, 1], [], []>} : vector<16x16xf32>, vector<16x8xf32>, vector<16x8xf32> -> vector<16x8xf32>
    %c24 = arith.constant 24 : index
    %c0_35 = arith.constant 0 : index
    %91 = vector.load %arg4[%c24, %c0_35] : memref<96x32xf32, #tpu.memory_space<vmem>>, vector<8x32xf32>
    %cst_36 = arith.constant dense<0.000000e+00> : vector<16x32xf32>
    %92 = tpu.matmul %90, %91, %cst_36 {dimension_numbers = #tpu.dot_dimension_numbers<[1], [0], [0], [1], [0, 0, 1, 1], [], []>} : vector<16x8xf32>, vector<8x32xf32>, vector<16x32xf32> -> vector<16x32xf32>
    %93 = arith.addf %71, %92 : vector<16x32xf32>
    %94 = arith.addf %93, %0 : vector<16x32xf32>
    %cst_37 = arith.constant dense<0.000000e+00> : vector<16xf32>
    %95 = vector.multi_reduction <add>, %94, %cst_37 [1] : vector<16x32xf32> to vector<16xf32>
    %96 = vector.shape_cast %95 : vector<16xf32> to vector<16x1xf32>
    %cst_38 = arith.constant 3.200000e+01 : f32
    %97 = vector.broadcast %cst_38 : f32 to vector<16x1xf32>
    %98 = arith.divf %96, %97 : vector<16x1xf32>
    %99 = vector.broadcast %98 : vector<16x1xf32> to vector<16x32xf32>
    %100 = arith.subf %94, %99 : vector<16x32xf32>
    %101 = arith.mulf %100, %100 : vector<16x32xf32>
    %cst_39 = arith.constant dense<0.000000e+00> : vector<16xf32>
    %102 = vector.multi_reduction <add>, %101, %cst_39 [1] : vector<16x32xf32> to vector<16xf32>
    %103 = vector.shape_cast %102 : vector<16xf32> to vector<16x1xf32>
    %cst_40 = arith.constant 3.200000e+01 : f32
    %104 = vector.broadcast %cst_40 : f32 to vector<16x1xf32>
    %105 = arith.divf %103, %104 : vector<16x1xf32>
    %106 = vector.broadcast %98 : vector<16x1xf32> to vector<16x32xf32>
    %107 = arith.subf %94, %106 : vector<16x32xf32>
    %cst_41 = arith.constant 9.99999974E-6 : f32
    %108 = vector.broadcast %cst_41 : f32 to vector<16x1xf32>
    %109 = arith.addf %105, %108 : vector<16x1xf32>
    %110 = math.rsqrt %109 : vector<16x1xf32>
    %111 = vector.broadcast %110 : vector<16x1xf32> to vector<16x32xf32>
    %112 = arith.mulf %107, %111 : vector<16x32xf32>
    %113 = vector.extract_strided_slice %2 {offsets = [0, 0], sizes = [1, 32], strides = [1, 1]} : vector<8x64xf32> to vector<1x32xf32>
    %114 = vector.broadcast %113 : vector<1x32xf32> to vector<16x32xf32>
    %115 = arith.mulf %112, %114 : vector<16x32xf32>
    %116 = vector.extract_strided_slice %2 {offsets = [1, 0], sizes = [1, 32], strides = [1, 1]} : vector<8x64xf32> to vector<1x32xf32>
    %117 = vector.broadcast %116 : vector<1x32xf32> to vector<16x32xf32>
    %118 = arith.addf %115, %117 : vector<16x32xf32>
    %c0_42 = arith.constant 0 : index
    %c0_43 = arith.constant 0 : index
    %119 = vector.load %arg5[%c0_42, %c0_43] : memref<32x64xf32, #tpu.memory_space<vmem>>, vector<32x64xf32>
    %cst_44 = arith.constant dense<0.000000e+00> : vector<16x64xf32>
    %120 = tpu.matmul %118, %119, %cst_44 {dimension_numbers = #tpu.dot_dimension_numbers<[1], [0], [0], [1], [0, 0, 1, 1], [], []>} : vector<16x32xf32>, vector<32x64xf32>, vector<16x64xf32> -> vector<16x64xf32>
    %121 = vector.extract_strided_slice %2 {offsets = [5, 0], sizes = [1, 64], strides = [1, 1]} : vector<8x64xf32> to vector<1x64xf32>
    %122 = vector.broadcast %121 : vector<1x64xf32> to vector<16x64xf32>
    %123 = arith.addf %120, %122 : vector<16x64xf32>
    %cst_45 = arith.constant 0.000000e+00 : f32
    %124 = vector.broadcast %cst_45 : f32 to vector<16x64xf32>
    %125 = arith.maximumf %123, %124 : vector<16x64xf32>
    %c32 = arith.constant 32 : index
    %c0_46 = arith.constant 0 : index
    %126 = vector.load %arg4[%c32, %c0_46] : memref<96x32xf32, #tpu.memory_space<vmem>>, vector<64x32xf32>
    %cst_47 = arith.constant dense<0.000000e+00> : vector<16x32xf32>
    %127 = tpu.matmul %125, %126, %cst_47 {dimension_numbers = #tpu.dot_dimension_numbers<[1], [0], [0], [1], [0, 0, 1, 1], [], []>} : vector<16x64xf32>, vector<64x32xf32>, vector<16x32xf32> -> vector<16x32xf32>
    %128 = vector.extract_strided_slice %2 {offsets = [4, 0], sizes = [1, 32], strides = [1, 1]} : vector<8x64xf32> to vector<1x32xf32>
    %129 = vector.broadcast %128 : vector<1x32xf32> to vector<16x32xf32>
    %130 = arith.addf %127, %129 : vector<16x32xf32>
    %131 = arith.addf %130, %118 : vector<16x32xf32>
    %cst_48 = arith.constant dense<0.000000e+00> : vector<16xf32>
    %132 = vector.multi_reduction <add>, %131, %cst_48 [1] : vector<16x32xf32> to vector<16xf32>
    %133 = vector.shape_cast %132 : vector<16xf32> to vector<16x1xf32>
    %cst_49 = arith.constant 3.200000e+01 : f32
    %134 = vector.broadcast %cst_49 : f32 to vector<16x1xf32>
    %135 = arith.divf %133, %134 : vector<16x1xf32>
    %136 = vector.broadcast %135 : vector<16x1xf32> to vector<16x32xf32>
    %137 = arith.subf %131, %136 : vector<16x32xf32>
    %138 = arith.mulf %137, %137 : vector<16x32xf32>
    %cst_50 = arith.constant dense<0.000000e+00> : vector<16xf32>
    %139 = vector.multi_reduction <add>, %138, %cst_50 [1] : vector<16x32xf32> to vector<16xf32>
    %140 = vector.shape_cast %139 : vector<16xf32> to vector<16x1xf32>
    %cst_51 = arith.constant 3.200000e+01 : f32
    %141 = vector.broadcast %cst_51 : f32 to vector<16x1xf32>
    %142 = arith.divf %140, %141 : vector<16x1xf32>
    %143 = vector.broadcast %135 : vector<16x1xf32> to vector<16x32xf32>
    %144 = arith.subf %131, %143 : vector<16x32xf32>
    %cst_52 = arith.constant 9.99999997E-7 : f32
    %145 = vector.broadcast %cst_52 : f32 to vector<16x1xf32>
    %146 = arith.addf %142, %145 : vector<16x1xf32>
    %147 = math.rsqrt %146 : vector<16x1xf32>
    %148 = vector.broadcast %147 : vector<16x1xf32> to vector<16x32xf32>
    %149 = arith.mulf %144, %148 : vector<16x32xf32>
    %150 = vector.extract_strided_slice %2 {offsets = [2, 0], sizes = [1, 32], strides = [1, 1]} : vector<8x64xf32> to vector<1x32xf32>
    %151 = vector.broadcast %150 : vector<1x32xf32> to vector<16x32xf32>
    %152 = arith.mulf %149, %151 : vector<16x32xf32>
    %153 = vector.extract_strided_slice %2 {offsets = [3, 0], sizes = [1, 32], strides = [1, 1]} : vector<8x64xf32> to vector<1x32xf32>
    %154 = vector.broadcast %153 : vector<1x32xf32> to vector<16x32xf32>
    %155 = arith.addf %152, %154 : vector<16x32xf32>
    %c0_53 = arith.constant 0 : index
    %c0_54 = arith.constant 0 : index
    %156 = vector.load %arg7[%c0_53, %c0_54] : memref<16x32xf32, #tpu.memory_space<vmem>>, vector<16x32xf32>
    tpu.vector_store %arg7[%c0_53, %c0_54], %155 {strides = array<i32>} : memref<16x32xf32, #tpu.memory_space<vmem>>, vector<16x32xf32>,
    return
  }
  func.func @transform_0(%arg0: i32) -> (i32, i32) {
    %c0_i32 = arith.constant 0 : i32
    %c0_i32_0 = arith.constant 0 : i32
    %c0_i32_1 = arith.constant 0 : i32
    return %c0_i32, %c0_i32_0 : i32, i32
  }
  func.func @transform_1(%arg0: i32) -> (i32, i32) {
    %c0_i32 = arith.constant 0 : i32
    %c0_i32_0 = arith.constant 0 : i32
    %c0_i32_1 = arith.constant 0 : i32
    return %c0_i32, %c0_i32_0 : i32, i32
  }
  func.func @transform_2(%arg0: i32) -> (i32, i32) {
    %c0_i32 = arith.constant 0 : i32
    %c0_i32_0 = arith.constant 0 : i32
    %c0_i32_1 = arith.constant 0 : i32
    return %c0_i32, %c0_i32_0 : i32, i32
  }
  func.func @transform_3(%arg0: i32) -> (i32, i32) {
    %c0_i32 = arith.constant 0 : i32
    %c0_i32_0 = arith.constant 0 : i32
    %c0_i32_1 = arith.constant 0 : i32
    return %c0_i32, %c0_i32_0 : i32, i32
  }
  func.func @transform_4(%arg0: i32) -> (i32, i32) {
    %c0_i32 = arith.constant 0 : i32
    %c0_i32_0 = arith.constant 0 : i32
    %c0_i32_1 = arith.constant 0 : i32
    return %c0_i32, %c0_i32_0 : i32, i32
  }
  func.func @transform_5(%arg0: i32) -> (i32, i32) {
    %c0_i32 = arith.constant 0 : i32
    %c0_i32_0 = arith.constant 0 : i32
    %c0_i32_1 = arith.constant 0 : i32
    return %c0_i32, %c0_i32_0 : i32, i32
  }
  func.func @transform_6(%arg0: i32) -> (i32, i32) {
    %c0_i32 = arith.constant 0 : i32
    %c0_i32_0 = arith.constant 0 : i32
    %c0_i32_1 = arith.constant 0 : i32
    return %c0_i32, %c0_i32_0 : i32, i32
  }
}

</mosaic_0001>

<bundles_post_ra>
// kernel: encoder_layer.1
= control target key start
LH: loop header
LB: loop body
LE: loop exit
PB: predicated region body
PF: predicated region fallthrough
CT: control target
= control target key end

     0   :  { %s1208_s0 = inlined_call_operand.vmem [shape: f32[16,32], index: 0, kind: input, shape index: {}]   ;;  %s1209_s1 = inlined_call_operand.vmem [shape: f32[16,16], index: 1, kind: input, shape index: {}]   ;;  %s1210_s2 = inlined_call_operand.vmem [shape: f32[32,96], index: 2, kind: input, shape index: {}]   ;;  %s1211_s3 = inlined_call_operand.vmem [shape: f32[96,32], index: 3, kind: input, shape index: {}]   ;;  %s1212_s4 = inlined_call_operand.vmem [shape: f32[32,64], index: 4, kind: input, shape index: {}]   ;;  %s1213_s5 = inlined_call_operand.vmem [shape: f32[8,64], index: 5, kind: input, shape index: {}]   ;;  %s1214_s6 = inlined_call_operand.hbm [shape: f32[16,32], index: 6, kind: output, shape index: {}]  }
   0x1   :  { %v32_v0 = vld [vmem:[%s1210_s2 + $0x18] sm:$0xff]  ;;  %v31_v1 = vld [vmem:[%s1210_s2 + $0x10] sm:$0xff]  ;;  %v30_v2 = vld [vmem:[%s1210_s2 + $0x8] sm:$0xff] }
   0x2   :  { %831 = vmatpush.msra.mxu3 %v32_v0  ;;  %52 = vmatpush.msra.mxu0 %v32_v0 }
   0x3   :  { %11 = vsyncpa [#allocation3], 0  ;;  %v29_v3 = vld [vmem:[%s1210_s2] sm:$0xff]  ;;  %v1003_v4 = vld [vmem:[%s1208_s0 + $0x8] sm:$0xff]  ;;  %vm33_vm0 = vcmask 261120   ;;  %s938_s2 = smov 96  }
   0x4   :  { %832 = vmatpush.msra.mxu3 %v31_v1  ;;  %53 = vmatpush.msra.mxu0 %v31_v1  ;;  %v1008_v5 = vld [vmem:[%s1208_s0] sm:$0xff]  ;;  %vm69_vm1 = vcmask 64512   ;;  %vm105_vm2 = vcmask 130048   ;;  %v1036_v16 = vld [vmem:[%s1209_s1 + $0x8] sm:$0xff]  ;;  %s939_s12 = smov 88   ;;  %s940_s13 = smov 120  }
   0x5   :  { %v1029_v11 = vld [vmem:[%s1209_s1] sm:$0xff]  ;;  %s941_s14 = smov 72   ;;  %s942_s1 = smov 112   ;;  %vm691_vm10 = vcmask 523264  }
   0x6   :  { %833 = vmatpush.msra.mxu3 %v30_v2  ;;  %54 = vmatpush.msra.mxu0 %v30_v2  ;;  %v163_v28 = vld [vmem:[%s1211_s3] sm:$0xff]  ;;  %s943_s17 = smov 64   ;;  %s944_s18 = smov 80  }
   0x7   :  { %s945_s19 = smov 104   ;;  %s946_s20 = smov 56  }
   0x8   :  { %834 = vmatpush.msra.mxu3 %v29_v3  ;;  %55 = vmatpush.msra.mxu0 %v29_v3  ;;  %s947_s21 = smov 48   ;;  %s948_s22 = smov 40  }
   0x9   :  { %794 = vmatmul.msk.f32.vlgmr.msra.gmra.mxu3 %vm33_vm0, %v1003_v4  ;;  %793 = vmatmul.msk.f32.vlgmr.msra.gmra.mxu0 %vm33_vm0, %v1008_v5  ;;  %s781_s29 = sshll.u32 %s1214_s6, 4  ;;  %s951_s30 = smov 128   ;;  %s782_s29 = int_to_ptr.hbm [resolvable:$true] %s781_s29 }
   0xa   :  { %s952_s7 = smov 8  }
  0x86   :  { %v1017_v7 = vpop.f32.mrf.mxu0 }
  0x8c   :  { %v1014_v6 = vpop.f32.mrf.mxu3 }
  0x8d   :  { %67 = vrot.lane.b32.xlu0 %v1014_v6, %s938_s2  ;;  %v1055_v32 = vpack.i.bf16 %v1017_v7, %v1014_v6 }
  0x95   :  { %65 = vrot.lane.b32.xlu0 %v1017_v7, %s938_s2 }
  0xff   :  { %v68_v8 = vpop.permute.xlu0 %67 }
 0x100   :  { %795 = vmatpush.xpose.msk.msra.mxu1 %vm69_vm1, %v68_v8 }
 0x107   :  { %v66_v9 = vpop.permute.xlu0 %65 }
 0x108   :  { %796 = vmatpush.xpose.msk.msra.mxu1 %vm69_vm1, %v66_v9 }
 0x10b   :  { %797 = vmatmul.msk.f32.vlgmr.msra.gmra.mxu1 %vm69_vm1, %v1017_v7 }
 0x10c   :  { %315 = vmatpush.msrb.mxu1 %v163_v28 }
 0x113   :  { %798 = vmatmul.msk.f32.gmra.mxu1 %vm69_vm1, %v1014_v6 }
 0x188   :  { %v95_v10 = vpop.f32.mrf.mxu1 }
 0x189   :  { %v101_v12 = vmul.f32 0.35355338, %v95_v10 }
 0x18b   :  { %v103_v13 = vadd.f32 %v101_v12, %v1029_v11 }
 0x18d   :  { %v106_v14 = vsel %vm105_vm2, %v103_v13, -inf }
 0x18e   :  { %107 = vmax.xlane.f32.xlu1 %v106_v14 }
 0x190   :  { %v98_v15 = vpop.f32.mrf.mxu1 }
 0x191   :  { %v102_v17 = vmul.f32 0.35355338, %v98_v15 }
 0x193   :  { %v104_v18 = vadd.f32 %v102_v17, %v1036_v16 }
 0x195   :  { %v109_v19 = vsel %vm105_vm2, %v104_v18, -inf }
 0x196   :  { %110 = vmax.xlane.f32.xlu1 %v109_v19 }
 0x1af   :  { %170 = vrot.lane.b32.xlu1 %v1014_v6, %s939_s12 }
 0x1b7   :  { %166 = vrot.lane.b32.xlu1 %v1014_v6, %s940_s13 }
 0x1bf   :  { %461 = vrot.lane.b32.xlu1 %v1014_v6, %s941_s14 }
 0x1c7   :  { %459 = vrot.lane.b32.xlu1 %v1017_v7, %s941_s14 }
 0x1cf   :  { %325 = vrot.lane.b32.xlu1 %v1014_v6, %s942_s1 }
 0x201   :  { %v108_v20 = vpop.xlane.xlu1 %107 }
 0x202   :  { %v112_v21 = vsub.f32 %v103_v13, %v108_v20 }
 0x204   :  { %v114_v22 = vmul.f32 1.442695, %v112_v21 }
 0x206   :  { %870 = vpow2.f32 %v114_v22 }
 0x209   :  { %v111_v23 = vpop.xlane.xlu1 %110 }
 0x20a   :  { %v113_v24 = vsub.f32 %v104_v18, %v111_v23 }
 0x20c   :  { %v871_v25 = vpop.eup %870  ;;  %v116_v26 = vmul.f32 1.442695, %v113_v24 }
 0x20d   :  { %v118_v27 = vsel %vm105_vm2, %v871_v25, 0.0 }
 0x20e   :  { %872 = vpow2.f32 %v116_v26  ;;  %119 = vadd.xlane.f32.xlu2 %v118_v27 }
 0x214   :  { %v873_v29 = vpop.eup %872 }
 0x215   :  { %v121_v30 = vsel %vm105_vm2, %v873_v29, 0.0 }
 0x216   :  { %122 = vadd.xlane.f32.xlu0 %v121_v30 }
 0x221   :  { %v171_v31 = vpop.permute.xlu1 %170 }
 0x222   :  { %801 = vmatpush.xpose.msk.msrb.mxu3 %vm69_vm1, %v171_v31 }
 0x226   :  { %851 = vrot.lane.b32.xlu2 %v1055_v32, %s943_s17 }
 0x229   :  { %v167_v33 = vpop.permute.xlu1 %166 }
 0x22a   :  { %323 = vrot.lane.b32.xlu0 %v1017_v7, %s942_s1 }
 0x22e   :  { %168 = vrot.lane.b32.xlu2 %v1017_v7, %s939_s12 }
 0x231   :  { %v462_v34 = vpop.permute.xlu1 %461 }
 0x232   :  { %819 = vmatpush.xpose.msk.msra.mxu1 %vm69_vm1, %v462_v34 }
 0x236   :  { %164 = vrot.lane.b32.xlu2 %v1017_v7, %s940_s13 }
 0x239   :  { %v460_v35 = vpop.permute.xlu1 %459 }
 0x23a   :  { %820 = vmatpush.xpose.msk.msra.mxu1 %vm69_vm1, %v460_v35 }
 0x23e   :  { %329 = vrot.lane.b32.xlu2 %v1014_v6, %s944_s18 }
 0x241   :  { %v326_v50 = vpop.permute.xlu1 %325 }
 0x246   :  { %327 = vrot.lane.b32.xlu2 %v1017_v7, %s944_s18 }
 0x24e   :  { %455 = vrot.lane.b32.xlu2 %v1017_v7, %s945_s19 }
 0x256   :  { %457 = vrot.lane.b32.xlu2 %v1014_v6, %s945_s19 }
 0x281   :  { %v120_v36 = vpop.xlane.xlu2 %119 }
 0x282   :  { %874 = vrcp.f32 %v120_v36 }
 0x288   :  { %v875_v39 = vpop.eup %874 }
 0x289   :  { %v852_v37 = vpop.permute.xlu2 %851  ;;  %v123_v38 = vpop.xlane.xlu0 %122  ;;  %v126_v42 = vmul.f32 %v875_v39, %v871_v25 }
 0x28a   :  { %v853_v40 = vunpack.i.l.bf16 %v852_v37  ;;  %876 = vrcp.f32 %v123_v38  ;;  %v854_v41 = vunpack.i.h.bf16 %v852_v37 }
 0x28c   :  { %154 = vmatpush.msra.mxu2 %v853_v40 }
 0x28e   :  { %155 = vmatpush.msra.mxu2 %v854_v41 }
 0x28f   :  { %799 = vmatmul.msk.f32.vlgmr.msra.gmra.mxu2 %vm105_vm2, %v126_v42 }
 0x290   :  { %v877_v44 = vpop.eup %876 }
 0x291   :  { %v169_v43 = vpop.permute.xlu2 %168  ;;  %v127_v45 = vmul.f32 %v877_v44, %v873_v29 }
 0x292   :  { %802 = vmatpush.xpose.msk.msrb.mxu3 %vm69_vm1, %v169_v43 }
 0x297   :  { %800 = vmatmul.msk.f32.gmra.mxu2 %vm105_vm2, %v127_v45 }
 0x299   :  { %v165_v46 = vpop.permute.xlu2 %164 }
 0x29a   :  { %803 = vmatmul.msk.f32.vlgmr.msrb.gmra.mxu3 %vm69_vm1, %v165_v46 }
 0x29c   :  { %v324_v49 = vpop.permute.xlu0 %323 }
 0x2a1   :  { %v330_v47 = vpop.permute.xlu2 %329 }
 0x2a2   :  { %804 = vmatmul.msk.f32.gmra.mxu3 %vm69_vm1, %v167_v33 }
 0x2a3   :  { %811 = vmatpush.xpose.msk.msra.mxu3 %vm69_vm1, %v330_v47 }
 0x2a9   :  { %v328_v48 = vpop.permute.xlu2 %327 }
 0x2aa   :  { %812 = vmatpush.xpose.msk.msra.mxu3 %vm69_vm1, %v328_v48 }
 0x2ad   :  { %813 = vmatmul.msk.f32.vlgmr.msra.gmra.mxu3 %vm69_vm1, %v324_v49 }
 0x2b1   :  { %v456_v55 = vpop.permute.xlu2 %455 }
 0x2b5   :  { %814 = vmatmul.msk.f32.gmra.mxu3 %vm69_vm1, %v326_v50 }
 0x2b9   :  { %v458_v61 = vpop.permute.xlu2 %457 }
 0x312   :  { %v157_v51 = vpop.f32.mrf.mxu2 }
 0x313   :  { %809 = vmatmul.msk.f32.vlgmr.msrb.gmra.mxu1 %vm69_vm1, %v157_v51 }
 0x31a   :  { %v160_v52 = vpop.f32.mrf.mxu2 }
 0x31b   :  { %810 = vmatmul.msk.f32.gmra.mxu1 %vm69_vm1, %v160_v52 }
 0x31d   :  { %v197_v53 = vpop.f32.mrf.mxu3 }
 0x31e   :  { %v203_v54 = vmul.f32 0.35355338, %v197_v53 }
 0x320   :  { %v205_v56 = vadd.f32 %v203_v54, %v1029_v11 }
 0x322   :  { %v207_v57 = vsel %vm105_vm2, %v205_v56, -inf }
 0x323   :  { %208 = vmax.xlane.f32.xlu1 %v207_v57  ;;  %821 = vmatmul.msk.f32.vlgmr.msra.gmra.mxu1 %vm69_vm1, %v456_v55 }
 0x325   :  { %v200_v58 = vpop.f32.mrf.mxu3 }
 0x326   :  { %v204_v59 = vmul.f32 0.35355338, %v200_v58 }
 0x328   :  { %v206_v60 = vadd.f32 %v204_v59, %v1036_v16 }
 0x32a   :  { %v210_v62 = vsel %vm105_vm2, %v206_v60, -inf }
 0x32b   :  { %211 = vmax.xlane.f32.xlu0 %v210_v62  ;;  %822 = vmatmul.msk.f32.gmra.mxu1 %vm69_vm1, %v458_v61 }
 0x330   :  { %v356_v63 = vpop.f32.mrf.mxu3 }
 0x331   :  { %v362_v0 = vmul.f32 0.35355338, %v356_v63 }
 0x333   :  { %v364_v1 = vadd.f32 %v362_v0, %v1029_v11 }
 0x335   :  { %v366_v2 = vsel %vm105_vm2, %v364_v1, -inf }
 0x336   :  { %367 = vmax.xlane.f32.xlu1 %v366_v2 }
 0x338   :  { %v359_v15 = vpop.f32.mrf.mxu3 }
 0x339   :  { %v363_v20 = vmul.f32 0.35355338, %v359_v15 }
 0x33b   :  { %v365_v26 = vadd.f32 %v363_v20, %v1036_v16 }
 0x33d   :  { %v369_v30 = vsel %vm105_vm2, %v365_v26, -inf }
 0x390   :  { %v1088_v3 = vpop.f32.mrf.mxu1 }
 0x396   :  { %v209_v6 = vpop.xlane.xlu1 %208 }
 0x397   :  { %v213_v7 = vsub.f32 %v205_v56, %v209_v6 }
 0x398   :  { %v1090_v8 = vpop.f32.mrf.mxu1 }
 0x399   :  { %v215_v9 = vmul.f32 1.442695, %v213_v7 }
 0x39b   :  { %878 = vpow2.f32 %v215_v9 }
 0x39e   :  { %v212_v13 = vpop.xlane.xlu0 %211 }
 0x39f   :  { %v214_v19 = vsub.f32 %v206_v60, %v212_v13 }
 0x3a0   :  { %v488_v10 = vpop.f32.mrf.mxu1 }
 0x3a1   :  { %v1092_v12 = vpop.eup %878  ;;  %v494_v14 = vmul.f32 0.35355338, %v488_v10  ;;  %v217_v22 = vmul.f32 1.442695, %v214_v19 }
 0x3a2   :  { %v219_v17 = vsel %vm105_vm2, %v1092_v12, 0.0 }
 0x3a3   :  { %220 = vadd.xlane.f32.xlu1 %v219_v17  ;;  %v496_v18 = vadd.f32 %v494_v14, %v1029_v11  ;;  %880 = vpow2.f32 %v217_v22 }
 0x3a5   :  { %v498_v21 = vsel %vm105_vm2, %v496_v18, -inf }
 0x3a6   :  { %499 = vmax.xlane.f32.xlu2 %v498_v21 }
 0x3a8   :  { %v491_v23 = vpop.f32.mrf.mxu1 }
 0x3a9   :  { %v495_v24 = vmul.f32 0.35355338, %v491_v23  ;;  %v368_v25 = vpop.xlane.xlu1 %367  ;;  %v881_v31 = vpop.eup %880  ;;  %v555_v23 = vld [vmem:[%s1211_s3 + $0x18] sm:$0xff] }
 0x3aa   :  { %v372_v28 = vsub.f32 %v364_v1, %v368_v25  ;;  %v222_v33 = vsel %vm105_vm2, %v881_v31, 0.0  ;;  %v264_v1 = vld [vmem:[%s1211_s3 + $0x8] sm:$0xff] }
 0x3ab   :  { %v497_v27 = vadd.f32 %v495_v24, %v1036_v16  ;;  %286 = vmatpush.msrb.mxu0 %v264_v1 }
 0x3ac   :  { %v374_v11 = vmul.f32 1.442695, %v372_v28 }
 0x3ad   :  { %v501_v29 = vsel %vm105_vm2, %v497_v27, -inf }
 0x3ae   :  { %502 = vmax.xlane.f32.xlu0 %v501_v29  ;;  %370 = vmax.xlane.f32.xlu2 %v369_v30  ;;  %882 = vpow2.f32 %v374_v11 }
 0x3b4   :  { %v883_v34 = vpop.eup %882 }
 0x3b5   :  { %v378_v35 = vsel %vm105_vm2, %v883_v34, 0.0 }
 0x3b6   :  { %223 = vadd.xlane.f32.xlu2 %v222_v33 }
 0x3be   :  { %379 = vadd.xlane.f32.xlu2 %v378_v35 }
 0x3c2   :  { %856 = vrot.lane.b32.xlu0 %v1055_v32, %s946_s20 }
 0x3ca   :  { %866 = vrot.lane.b32.xlu0 %v1055_v32, %s947_s21 }
 0x416   :  { %v221_v47 = vpop.xlane.xlu1 %220 }
 0x419   :  { %v500_v16 = vpop.xlane.xlu2 %499 }
 0x41a   :  { %v504_v36 = vsub.f32 %v496_v18, %v500_v16 }
 0x41c   :  { %v506_v37 = vmul.f32 1.442695, %v504_v36 }
 0x41e   :  { %884 = vpow2.f32 %v506_v37 }
 0x421   :  { %v503_v38 = vpop.xlane.xlu0 %502  ;;  %v371_v39 = vpop.xlane.xlu2 %370 }
 0x422   :  { %v505_v40 = vsub.f32 %v497_v27, %v503_v38  ;;  %v373_v43 = vsub.f32 %v365_v26, %v371_v39 }
 0x424   :  { %v885_v41 = vpop.eup %884  ;;  %v508_v42 = vmul.f32 1.442695, %v505_v40  ;;  %v376_v45 = vmul.f32 1.442695, %v373_v43 }
 0x425   :  { %v510_v44 = vsel %vm105_vm2, %v885_v41, 0.0 }
 0x426   :  { %886 = vpow2.f32 %v508_v42  ;;  %511 = vadd.xlane.f32.xlu1 %v510_v44 }
 0x427   :  { %888 = vpow2.f32 %v376_v45 }
 0x428   :  { %890 = vrcp.f32 %v221_v47 }
 0x429   :  { %v224_v50 = vpop.xlane.xlu2 %223 }
 0x42a   :  { %892 = vrcp.f32 %v224_v50 }
 0x42c   :  { %v887_v46 = vpop.eup %886 }
 0x42d   :  { %v513_v48 = vsel %vm105_vm2, %v887_v46, 0.0  ;;  %v889_v49 = vpop.eup %888 }
 0x42e   :  { %514 = vadd.xlane.f32.xlu2 %v513_v48  ;;  %v891_v52 = vpop.eup %890  ;;  %v381_v53 = vsel %vm105_vm2, %v889_v49, 0.0 }
 0x42f   :  { %v227_v56 = vmul.f32 %v891_v52, %v1092_v12 }
 0x430   :  { %v893_v59 = vpop.eup %892 }
 0x431   :  { %v380_v57 = vpop.xlane.xlu2 %379  ;;  %v228_v62 = vmul.f32 %v893_v59, %v881_v31 }
 0x432   :  { %894 = vrcp.f32 %v380_v57  ;;  %v647_v57 = vld [vmem:[%s1212_s4 + $0x8] sm:$0xff] }
 0x434   :  { %v857_v51 = vpop.permute.xlu0 %856 }
 0x435   :  { %v858_v54 = vunpack.i.l.bf16 %v857_v51  ;;  %v859_v55 = vunpack.i.h.bf16 %v857_v51 }
 0x436   :  { %382 = vadd.xlane.f32.xlu2 %v381_v53 }
 0x437   :  { %255 = vmatpush.msrb.mxu2 %v858_v54 }
 0x438   :  { %v895_v63 = vpop.eup %894 }
 0x439   :  { %256 = vmatpush.msrb.mxu2 %v859_v55  ;;  %v386_v0 = vmul.f32 %v895_v63, %v883_v34  ;;  %v649_v55 = vld [vmem:[%s1212_s4 + $0x18] sm:$0xff]  ;;  %v688_v63 = vld [vmem:[%s1211_s3 + $0x50] sm:$0xff] }
 0x43a   :  { %805 = vmatmul.msk.f32.vlgmr.msrb.gmra.mxu2 %vm105_vm2, %v227_v56  ;;  %v648_v56 = vld [vmem:[%s1212_s4 + $0x10] sm:$0xff] }
 0x43c   :  { %v867_v58 = vpop.permute.xlu0 %866 }
 0x43d   :  { %v868_v60 = vunpack.i.l.bf16 %v867_v58  ;;  %v869_v61 = vunpack.i.h.bf16 %v867_v58  ;;  %v646_v58 = vld [vmem:[%s1212_s4] sm:$0xff] }
 0x43f   :  { %414 = vmatpush.msra.mxu2 %v868_v60  ;;  %861 = vrot.lane.b32.xlu1 %v1055_v32, %s948_s22  ;;  %v423_v32 = vld [vmem:[%s1211_s3 + $0x10] sm:$0xff] }
 0x440   :  { %445 = vmatpush.msra.mxu0 %v423_v32 }
 0x441   :  { %415 = vmatpush.msra.mxu2 %v869_v61 }
 0x442   :  { %806 = vmatmul.msk.f32.gmra.mxu2 %vm105_vm2, %v228_v62  ;;  %v689_v62 = vld [vmem:[%s1211_s3 + $0x58] sm:$0xff] }
 0x443   :  { %577 = vmatpush.msrb.mxu2 %v555_v23  ;;  %706 = vmatpush.msrb.mxu1 %v689_v62 }
 0x445   :  { %707 = vmatpush.msrb.mxu1 %v688_v63 }
 0x44a   :  { %815 = vmatmul.msk.f32.vlgmr.msra.gmra.mxu2 %vm105_vm2, %v386_v0  ;;  %v687_v0 = vld [vmem:[%s1211_s3 + $0x48] sm:$0xff] }
 0x44b   :  { %708 = vmatpush.msrb.mxu1 %v687_v0 }
 0x499   :  { %v512_v6 = vpop.xlane.xlu1 %511 }
 0x4a1   :  { %v515_v2 = vpop.xlane.xlu2 %514 }
 0x4a9   :  { %v383_v7 = vpop.xlane.xlu2 %382 }
 0x4aa   :  { %896 = vrcp.f32 %v383_v7 }
 0x4ab   :  { %898 = vrcp.f32 %v512_v6  ;;  %v686_v6 = vld [vmem:[%s1211_s3 + $0x40] sm:$0xff] }
 0x4ac   :  { %900 = vrcp.f32 %v515_v2  ;;  %709 = vmatpush.msrb.mxu1 %v686_v6 }
 0x4b0   :  { %v897_v9 = vpop.eup %896 }
 0x4b1   :  { %v862_v10 = vpop.permute.xlu1 %861  ;;  %v387_v12 = vmul.f32 %v897_v9, %v889_v49  ;;  %v899_v13 = vpop.eup %898  ;;  %v685_v9 = vld [vmem:[%s1211_s3 + $0x38] sm:$0xff] }
 0x4b2   :  { %v863_v14 = vunpack.i.l.bf16 %v862_v10  ;;  %v864_v15 = vunpack.i.h.bf16 %v862_v10  ;;  %v518_v17 = vmul.f32 %v899_v13, %v885_v41  ;;  %v901_v18 = vpop.eup %900  ;;  %710 = vmatpush.msrb.mxu1 %v685_v9 }
 0x4b3   :  { %816 = vmatmul.msk.f32.gmra.mxu2 %vm105_vm2, %v387_v12  ;;  %v519_v20 = vmul.f32 %v901_v18, %v887_v46 }
 0x4b4   :  { %546 = vmatpush.msrb.mxu3 %v863_v14  ;;  %v1176_v14 = vld [vmem:[%s1213_s5] sm:$0xff] }
 0x4b6   :  { %547 = vmatpush.msrb.mxu3 %v864_v15 }
 0x4b7   :  { %823 = vmatmul.msk.f32.vlgmr.msrb.gmra.mxu3 %vm105_vm2, %v518_v17 }
 0x4bd   :  { %v258_v19 = vpop.f32.mrf.mxu2 }
 0x4be   :  { %807 = vmatmul.msk.f32.vlgmr.msrb.gmra.mxu0 %vm69_vm1, %v258_v19 }
 0x4bf   :  { %824 = vmatmul.msk.f32.gmra.mxu3 %vm105_vm2, %v519_v20  ;;  %669 = vmatpush.msrb.mxu0 %v649_v55  ;;  %v640_v20 = vperm.slane %v1176_v14, 0 }
 0x4c1   :  { %670 = vmatpush.msrb.mxu0 %v648_v56 }
 0x4c3   :  { %671 = vmatpush.msrb.mxu0 %v647_v57 }
 0x4c5   :  { %v261_v21 = vpop.f32.mrf.mxu2  ;;  %672 = vmatpush.msrb.mxu0 %v646_v58 }
 0x4c6   :  { %808 = vmatmul.msk.f32.gmra.mxu0 %vm69_vm1, %v261_v21 }
 0x4cd   :  { %v417_v22 = vpop.f32.mrf.mxu2 }
 0x4ce   :  { %817 = vmatmul.msk.f32.vlgmr.msra.gmra.mxu0 %vm69_vm1, %v417_v22 }
 0x536   :  { %v420_v24 = vpop.f32.mrf.mxu2 }
 0x537   :  { %818 = vmatmul.msk.f32.gmra.mxu0 %vm69_vm1, %v420_v24  ;;  %v643_v24 = vperm.slane %v1176_v14, 1 }
 0x53a   :  { %v549_v25 = vpop.f32.mrf.mxu3 }
 0x53b   :  { %825 = vmatmul.msk.f32.vlgmr.msrb.gmra.mxu2 %vm69_vm1, %v549_v25  ;;  %v288_v27 = vpop.f32.mrf.mxu0 }
 0x53c   :  { %v318_v30 = vadd.f32 %v1088_v3, %v288_v27  ;;  %v949_v3 = vmov 32.0  }
 0x53d   :  { %902 = vrcp.f32 %v949_v3 }
 0x542   :  { %v552_v26 = vpop.f32.mrf.mxu3 }
 0x543   :  { %826 = vmatmul.msk.f32.gmra.mxu2 %vm69_vm1, %v552_v26  ;;  %v291_v28 = vpop.f32.mrf.mxu0  ;;  %v903_v42 = vpop.eup %902 }
 0x544   :  { %v321_v16 = vadd.f32 %v1090_v8, %v291_v28  ;;  %v596_v43 = vmul.f32 32.0, %v903_v42  ;;  %vm600_vm3 = vweird.f32 %v903_v42 }
 0x546   :  { %v597_v44 = vsub.f32 1.0, %v596_v43 }
 0x54b   :  { %v447_v29 = vpop.f32.mrf.mxu0 }
 0x54c   :  { %v453_v11 = vadd.f32 %v447_v29, %v318_v30 }
 0x5b4   :  { %v450_v35 = vpop.f32.mrf.mxu0 }
 0x5b5   :  { %v454_v37 = vadd.f32 %v450_v35, %v321_v16  ;;  %v683_v35 = vld [vmem:[%s1211_s3 + $0x28] sm:$0xff]  ;;  %v682_v16 = vld [vmem:[%s1211_s3 + $0x20] sm:$0xff] }
 0x5be   :  { %v579_v31 = vpop.f32.mrf.mxu2 }
 0x5bf   :  { %v585_v33 = vadd.f32 %v579_v31, %v453_v11 }
 0x5c1   :  { %v587_v34 = vadd.f32 %v585_v33, %v1008_v5  ;;  %v598_v5 = vmul.f32 %v903_v42, %v597_v44 }
 0x5c3   :  { %v589_v36 = vsel %vm33_vm0, %v587_v34, 0.0  ;;  %v599_v45 = vadd.f32 %v903_v42, %v598_v5 }
 0x5c4   :  { %590 = vadd.xlane.f32.xlu0 %v589_v36  ;;  %v650_v36 = vperm.slane %v1176_v14, 5 }
 0x5c5   :  { %v1138_v8 = vsel %vm600_vm3, %v903_v42, %v599_v45  ;;  %v690_v42 = vperm.slane %v1176_v14, 4 }
 0x5c6   :  { %v582_v38 = vpop.f32.mrf.mxu2 }
 0x5c7   :  { %v586_v39 = vadd.f32 %v582_v38, %v454_v37 }
 0x5c9   :  { %v588_v40 = vadd.f32 %v586_v39, %v1003_v4 }
 0x5cb   :  { %v592_v41 = vsel %vm33_vm0, %v588_v40, 0.0 }
 0x5cc   :  { %593 = vadd.xlane.f32.xlu2 %v592_v41 }
 0x637   :  { %v591_v46 = vpop.xlane.xlu0 %590 }
 0x638   :  { %v602_v47 = vmul.f32 %v1138_v8, %v591_v46 }
 0x63a   :  { %v604_v48 = vsub.f32 %v587_v34, %v602_v47  ;;  %v684_v34 = vld [vmem:[%s1211_s3 + $0x30] sm:$0xff]  ;;  %s950_s3 = smov [#allocation2]  }
 0x63b   :  { %711 = vmatpush.msrb.mxu1 %v684_v34  ;;  %s779_s26 = sshll.u32 %s950_s3, 4  ;;  %s780_s26 = int_to_ptr.vmem [resolvable:$true] %s779_s26 }
 0x63c   :  { %v606_v49 = vmul.f32 %v604_v48, %v604_v48 }
 0x63d   :  { %712 = vmatpush.msrb.mxu1 %v683_v35 }
 0x63e   :  { %v608_v4 = vsel %vm33_vm0, %v606_v49, 0.0 }
 0x63f   :  { %609 = vadd.xlane.f32.xlu1 %v608_v4  ;;  %v594_v50 = vpop.xlane.xlu2 %593  ;;  %713 = vmatpush.msrb.mxu1 %v682_v16 }
 0x640   :  { %v603_v51 = vmul.f32 %v1138_v8, %v594_v50 }
 0x642   :  { %v605_v52 = vsub.f32 %v588_v40, %v603_v51 }
 0x644   :  { %v607_v53 = vmul.f32 %v605_v52, %v605_v52 }
 0x646   :  { %v611_v54 = vsel %vm33_vm0, %v607_v53, 0.0 }
 0x647   :  { %612 = vadd.xlane.f32.xlu2 %v611_v54 }
 0x6b2   :  { %v610_v59 = vpop.xlane.xlu1 %609 }
 0x6b3   :  { %v614_v60 = vmul.f32 %v610_v59, %v1138_v8 }
 0x6b5   :  { %v616_v61 = vadd.f32 1e-05, %v614_v60 }
 0x6b7   :  { %904 = vrsqrt.f32 %v616_v61  ;;  %vm624_vm5 = vweird.f32 %v616_v61 }
 0x6ba   :  { %v613_v1 = vpop.xlane.xlu2 %612 }
 0x6bb   :  { %v615_v2 = vmul.f32 %v613_v1, %v1138_v8 }
 0x6bd   :  { %v905_v7 = vpop.eup %904  ;;  %v617_v32 = vadd.f32 1e-05, %v615_v2 }
 0x6be   :  { %v619_v10 = vmul.f32 %v905_v7, %v616_v61  ;;  %vm625_vm4 = vweird.f32 %v905_v7 }
 0x6bf   :  { %906 = vrsqrt.f32 %v617_v32  ;;  %vm626_vm6 = vmor %vm624_vm5, %vm625_vm4  ;;  %vm634_vm8 = vweird.f32 %v617_v32 }
 0x6c0   :  { %v620_v12 = vmul.f32 %v905_v7, %v619_v10 }
 0x6c2   :  { %v621_v13 = vmul.f32 0.5, %v620_v12 }
 0x6c4   :  { %v622_v15 = vsub.f32 1.5, %v621_v13  ;;  %v767_v13 = vperm.slane %v1176_v14, 2 }
 0x6c5   :  { %v907_v17 = vpop.eup %906 }
 0x6c6   :  { %v623_v18 = vmul.f32 %v905_v7, %v622_v15  ;;  %v629_v19 = vmul.f32 %v907_v17, %v617_v32  ;;  %vm635_vm7 = vweird.f32 %v907_v17 }
 0x6c7   :  { %vm636_vm9 = vmor %vm634_vm8, %vm635_vm7 }
 0x6c8   :  { %v627_v21 = vsel %vm626_vm6, %v905_v7, %v623_v18  ;;  %v630_v22 = vmul.f32 %v907_v17, %v629_v19 }
 0x6c9   :  { %v638_v23 = vmul.f32 %v627_v21, %v604_v48 }
 0x6ca   :  { %v631_v25 = vmul.f32 0.5, %v630_v22 }
 0x6cb   :  { %v641_v26 = vmul.f32 %v640_v20, %v638_v23 }
 0x6cc   :  { %v632_v27 = vsub.f32 1.5, %v631_v25 }
 0x6cd   :  { %v644_v28 = vadd.f32 %v643_v24, %v641_v26 }
 0x6ce   :  { %v633_v29 = vmul.f32 %v907_v17, %v632_v27 }
 0x6cf   :  { %827 = vmatmul.msk.f32.vlgmr.msrb.gmra.mxu0 %vm33_vm0, %v644_v28 }
 0x6d0   :  { %v637_v30 = vsel %vm636_vm9, %v907_v17, %v633_v29 }
 0x6d1   :  { %v639_v11 = vmul.f32 %v637_v30, %v605_v52 }
 0x6d3   :  { %v642_v31 = vmul.f32 %v640_v20, %v639_v11 }
 0x6d5   :  { %v645_v33 = vadd.f32 %v643_v24, %v642_v31 }
 0x6d7   :  { %828 = vmatmul.msk.f32.gmra.mxu0 %vm33_vm0, %v645_v33 }
 0x74c   :  { %v674_v37 = vpop.f32.mrf.mxu0 }
 0x74d   :  { %v675_v38 = vadd.f32 %v674_v37, %v650_v36 }
 0x74f   :  { %v680_v39 = vmax.f32 %v675_v38, 0.0 }
 0x751   :  { %829 = vmatmul.msk.f32.vlgmr.msrb.gmra.mxu1 %vm691_vm10, %v680_v39 }
 0x754   :  { %v677_v40 = vpop.f32.mrf.mxu0 }
 0x755   :  { %v678_v41 = vadd.f32 %v677_v40, %v650_v36 }
 0x757   :  { %v681_v3 = vmax.f32 %v678_v41, 0.0 }
 0x759   :  { %830 = vmatmul.msk.f32.gmra.mxu1 %vm691_vm10, %v681_v3 }
 0x7ce   :  { %v715_v43 = vpop.f32.mrf.mxu1 }
 0x7cf   :  { %v716_v44 = vadd.f32 %v715_v43, %v690_v42 }
 0x7d1   :  { %v721_v5 = vadd.f32 %v716_v44, %v644_v28 }
 0x7d3   :  { %v723_v45 = vsel %vm33_vm0, %v721_v5, 0.0 }
 0x7d4   :  { %724 = vadd.xlane.f32.xlu2 %v723_v45 }
 0x7d6   :  { %v718_v46 = vpop.f32.mrf.mxu1 }
 0x7d7   :  { %v719_v47 = vadd.f32 %v718_v46, %v690_v42 }
 0x7d9   :  { %v722_v48 = vadd.f32 %v719_v47, %v645_v33 }
 0x7db   :  { %v726_v49 = vsel %vm33_vm0, %v722_v48, 0.0 }
 0x7dc   :  { %727 = vadd.xlane.f32.xlu2 %v726_v49 }
 0x847   :  { %v725_v4 = vpop.xlane.xlu2 %724 }
 0x848   :  { %v729_v50 = vmul.f32 %v725_v4, %v1138_v8 }
 0x84a   :  { %v731_v51 = vsub.f32 %v721_v5, %v729_v50 }
 0x84c   :  { %v733_v52 = vmul.f32 %v731_v51, %v731_v51 }
 0x84e   :  { %v735_v53 = vsel %vm33_vm0, %v733_v52, 0.0 }
 0x84f   :  { %736 = vadd.xlane.f32.xlu2 %v735_v53  ;;  %v728_v54 = vpop.xlane.xlu2 %727 }
 0x850   :  { %v730_v55 = vmul.f32 %v728_v54, %v1138_v8 }
 0x852   :  { %v732_v56 = vsub.f32 %v722_v48, %v730_v55 }
 0x854   :  { %v734_v57 = vmul.f32 %v732_v56, %v732_v56 }
 0x856   :  { %v738_v58 = vsel %vm33_vm0, %v734_v57, 0.0 }
 0x857   :  { %739 = vadd.xlane.f32.xlu0 %v738_v58 }
 0x8c2   :  { %v737_v59 = vpop.xlane.xlu2 %736 }
 0x8c3   :  { %v741_v60 = vmul.f32 %v737_v59, %v1138_v8 }
 0x8c5   :  { %v743_v61 = vadd.f32 1e-06, %v741_v60 }
 0x8c7   :  { %908 = vrsqrt.f32 %v743_v61  ;;  %vm751_vm12 = vweird.f32 %v743_v61 }
 0x8ca   :  { %v740_v62 = vpop.xlane.xlu0 %739 }
 0x8cb   :  { %v742_v63 = vmul.f32 %v740_v62, %v1138_v8  ;;  %v770_v8 = vperm.slane %v1176_v14, 3 }
 0x8cd   :  { %v909_v0 = vpop.eup %908  ;;  %v744_v1 = vadd.f32 1e-06, %v742_v63 }
 0x8ce   :  { %v746_v2 = vmul.f32 %v909_v0, %v743_v61  ;;  %vm752_vm11 = vweird.f32 %v909_v0 }
 0x8cf   :  { %910 = vrsqrt.f32 %v744_v1  ;;  %vm753_vm13 = vmor %vm751_vm12, %vm752_vm11  ;;  %vm761_vm15 = vweird.f32 %v744_v1 }
 0x8d0   :  { %v747_v6 = vmul.f32 %v909_v0, %v746_v2 }
 0x8d2   :  { %v748_v7 = vmul.f32 0.5, %v747_v6 }
 0x8d4   :  { %v749_v32 = vsub.f32 1.5, %v748_v7 }
 0x8d5   :  { %v911_v9 = vpop.eup %910 }
 0x8d6   :  { %v750_v10 = vmul.f32 %v909_v0, %v749_v32  ;;  %v756_v12 = vmul.f32 %v911_v9, %v744_v1  ;;  %vm762_vm14 = vweird.f32 %v911_v9 }
 0x8d7   :  { %vm763_vm1 = vmor %vm761_vm15, %vm762_vm14 }
 0x8d8   :  { %v754_v15 = vsel %vm753_vm13, %v909_v0, %v750_v10  ;;  %v757_v17 = vmul.f32 %v911_v9, %v756_v12 }
 0x8d9   :  { %v765_v18 = vmul.f32 %v754_v15, %v731_v51 }
 0x8da   :  { %v758_v19 = vmul.f32 0.5, %v757_v17 }
 0x8db   :  { %v768_v20 = vmul.f32 %v767_v13, %v765_v18 }
 0x8dc   :  { %v759_v21 = vsub.f32 1.5, %v758_v19 }
 0x8dd   :  { %v771_v22 = vadd.f32 %v770_v8, %v768_v20 }
 0x8de   :  { %v760_v23 = vmul.f32 %v911_v9, %v759_v21 }
 0x8df   :  { %773 = vst.msk [vmem:[#allocation2] sm:$0xff] %vm33_vm0, %v771_v22 }
 0x8e0   :  { %v764_v24 = vsel %vm763_vm1, %v911_v9, %v760_v23 }
 0x8e1   :  { %v766_v25 = vmul.f32 %v764_v24, %v732_v56 }
 0x8e3   :  { %v769_v26 = vmul.f32 %v767_v13, %v766_v25 }
 0x8e5   :  { %v772_v14 = vadd.f32 %v770_v8, %v769_v26 }
 0x8e7   :  { %774 = vst.msk [vmem:[#allocation2 + $0x8] sm:$0xff] %vm33_vm0, %v772_v14 }
 0x8e8   :  { %787 = dma.vmem_to_hbm [thread:$0]  %s780_s26, 256, %s782_s29, [#allocation3], %s951_s30, %s951_s30, %s952_s7  }
 0x8e9   :  { %936 = dma.done.wait [#allocation3], 256  }
 0x8ea   :  { %937 = vsyncadd [#allocation3], 4294967040 }
 0x8eb   :  { %792 = vsyncpa [#allocation3], 1 }

</bundles_post_ra>
